<compile_context>
chip_gen: v7x
topology: tpu7x:2x2x1
jax: 0.10.0
libtpu: 0.0.40
codegen_flags: <defaults>
</compile_context>

<pallas_src>
import functools

import jax
import jax.numpy as jnp
from jax import lax
from jax.experimental import pallas as pl
from jax.experimental.pallas import tpu as pltpu


_VMEM_TILE_BUDGET = 24 * 2**20   # double-buffered input tiles + accumulators
_VMEM_LIMIT_BYTES = 48 * 2**20   # safe on v7x (64 MiB physical) and v5e/v6e


def _round_up(a, b):
    return (a + b - 1) // b * b


def _pick_tile(contraction_len, bytes_per_unit, acc_bytes, granularity, cap):
    """Largest contraction tile (multiple of granularity) fitting the budget."""
    avail = _VMEM_TILE_BUDGET - acc_bytes
    t = max(avail // (2 * bytes_per_unit), granularity)   # 2x: double buffering
    t = (t // granularity) * granularity
    t = min(t, _round_up(contraction_len, granularity))
    t = min(t, _round_up(cap, granularity))
    return max(int(t), granularity)


# --------------------------------------------------------------------------
# Path A: feature-side Grams (contract over N).  Used when Dx/Dy are small
# relative to N.  Accumulates xx (Dx,Dx), yy (Dy,Dy), xy (Dy,Dx) over N tiles.
# --------------------------------------------------------------------------
def _cka_feature_kernel(x_ref, y_ref, o_ref, xx_acc, yy_acc, xy_acc):
    k = pl.program_id(1)

    @pl.when(k == 0)
    def _():
        xx_acc[...] = jnp.zeros_like(xx_acc)
        yy_acc[...] = jnp.zeros_like(yy_acc)
        xy_acc[...] = jnp.zeros_like(xy_acc)

    x = x_ref[0]   # (TN, Dx)  -- native dtype straight into the MXU
    y = y_ref[0]   # (TN, Dy)
    dn = (((0,), (0,)), ((), ()))   # contract over the row axis, no transposes
    xx_acc[...] += lax.dot_general(x, x, dn, preferred_element_type=jnp.float32)
    yy_acc[...] += lax.dot_general(y, y, dn, preferred_element_type=jnp.float32)
    xy_acc[...] += lax.dot_general(y, x, dn, preferred_element_type=jnp.float32)

    @pl.when(k == pl.num_programs(1) - 1)
    def _():
        xx = xx_acc[...]
        yy = yy_acc[...]
        xy = xy_acc[...]
        xx_norm = jnp.sqrt(jnp.sum(xx * xx))
        yy_norm = jnp.sqrt(jnp.sum(yy * yy))
        xy_sq = jnp.sum(xy * xy)
        val = xy_sq / (xx_norm * yy_norm)
        o_ref[...] = jnp.broadcast_to(val, o_ref.shape)   # lane-dense store


# --------------------------------------------------------------------------
# Path B: row-side Grams (contract over Dx / Dy).  Used when N is small.
# Gx = x x^T, Gy = y y^T; all three CKA terms follow from them.
# --------------------------------------------------------------------------
def _cka_row_kernel(x_ref, y_ref, o_ref, gx_acc, gy_acc, *, kx, ky):
    k = pl.program_id(1)

    @pl.when(k == 0)
    def _():
        gx_acc[...] = jnp.zeros_like(gx_acc)
        gy_acc[...] = jnp.zeros_like(gy_acc)

    dn = (((1,), (1,)), ((), ()))   # contract over the feature axis

    @pl.when(k < kx)
    def _():
        x = x_ref[0]   # (N, TD)
        gx_acc[...] += lax.dot_general(x, x, dn, preferred_element_type=jnp.float32)

    @pl.when(k < ky)
    def _():
        y = y_ref[0]   # (N, TD)
        gy_acc[...] += lax.dot_general(y, y, dn, preferred_element_type=jnp.float32)

    @pl.when(k == pl.num_programs(1) - 1)
    def _():
        gx = gx_acc[...]
        gy = gy_acc[...]
        xx_norm = jnp.sqrt(jnp.sum(gx * gx))
        yy_norm = jnp.sqrt(jnp.sum(gy * gy))
        xy_sq = jnp.sum(gx * gy)          # ||y^T x||_F^2 = <x x^T, y y^T>_F
        val = xy_sq / (xx_norm * yy_norm)
        o_ref[...] = jnp.broadcast_to(val, o_ref.shape)   # lane-dense store


def cka_forward(x, y, max_contraction_tile=2048):
    """x: (B, N, Dx), y: (B, N, Dy) -> (B,) float32."""
    B, N, Dx = x.shape
    By, Ny, Dy = y.shape
    assert B == By and N == Ny

    itemsize = max(x.dtype.itemsize, y.dtype.itemsize)

    # Pick the cheaper contraction at trace time (static shapes).
    flops_feature = N * (Dx * Dx + Dy * Dy + Dy * Dx)
    flops_row = N * N * (Dx + Dy)
    use_row = flops_row < flops_feature

    # Per-batch output block is a full (8,128) tile -> unmasked lane-dense
    # stores and no cross-core write hazard under a "parallel" batch axis.
    out_shape = jax.ShapeDtypeStruct((B, 8, 128), jnp.float32)
    out_spec = pl.BlockSpec((1, 8, 128), lambda b, k: (b, 0, 0))

    if use_row:
        acc_bytes = 2 * N * N * 4
        td = _pick_tile(max(Dx, Dy), 2 * N * itemsize, acc_bytes, 128,
                        max_contraction_tile)
        dx_pad = _round_up(Dx, td)
        dy_pad = _round_up(Dy, td)
        if dx_pad != Dx:   # zero feature columns do not change x x^T
            x = jnp.pad(x, ((0, 0), (0, 0), (0, dx_pad - Dx)))
        if dy_pad != Dy:
            y = jnp.pad(y, ((0, 0), (0, 0), (0, dy_pad - Dy)))
        kx, ky = dx_pad // td, dy_pad // td
        kmax = max(kx, ky)

        kernel = functools.partial(_cka_row_kernel, kx=kx, ky=ky)
        grid = (B, kmax)
        in_specs = [
            pl.BlockSpec((1, N, td), lambda b, k: (b, 0, jnp.minimum(k, kx - 1))),
            pl.BlockSpec((1, N, td), lambda b, k: (b, 0, jnp.minimum(k, ky - 1))),
        ]
        scratch = [
            pltpu.VMEM((N, N), jnp.float32),
            pltpu.VMEM((N, N), jnp.float32),
        ]
    else:
        acc_bytes = 4 * (Dx * Dx + Dy * Dy + Dy * Dx)
        # TODO(synk): for very large Dx/Dy the (Dx,Dx)/(Dy,Dy)/(Dy,Dx)
        # accumulators themselves should be tiled onto extra grid axes.
        tn = _pick_tile(N, (Dx + Dy) * itemsize, acc_bytes, 8,
                        max_contraction_tile)
        n_pad = _round_up(N, tn)
        if n_pad != N:   # zero rows do not change the Gram matrices
            pad = ((0, 0), (0, n_pad - N), (0, 0))
            x = jnp.pad(x, pad)
            y = jnp.pad(y, pad)

        kernel = _cka_feature_kernel
        grid = (B, n_pad // tn)
        in_specs = [
            pl.BlockSpec((1, tn, Dx), lambda b, k: (b, k, 0)),
            pl.BlockSpec((1, tn, Dy), lambda b, k: (b, k, 0)),
        ]
        scratch = [
            pltpu.VMEM((Dx, Dx), jnp.float32),
            pltpu.VMEM((Dy, Dy), jnp.float32),
            pltpu.VMEM((Dy, Dx), jnp.float32),
        ]

    out = pl.pallas_call(
        kernel,
        out_shape=out_shape,
        grid_spec=pltpu.PrefetchScalarGridSpec(
            num_scalar_prefetch=0,
            grid=grid,
            in_specs=in_specs,
            out_specs=out_spec,
            scratch_shapes=scratch,
        ),
        compiler_params=pltpu.CompilerParams(
            dimension_semantics=("parallel", "arbitrary"),
            vmem_limit_bytes=_VMEM_LIMIT_BYTES,
        ),
    )(x, y)
    return out[:, 0, 0]


def _cka_reference(x, y):
    xf = x.astype(jnp.float32)
    yf = y.astype(jnp.float32)
    hi = lax.Precision.HIGHEST
    xx = jnp.einsum("bnd,bne->bde", xf, xf, precision=hi)
    yy = jnp.einsum("bnd,bne->bde", yf, yf, precision=hi)
    xy = jnp.einsum("bnd,bne->bde", yf, xf, precision=hi)
    fro = lambda m: jnp.sqrt(jnp.sum(m * m, axis=(-2, -1)))
    return fro(xy) ** 2 / (fro(xx) * fro(yy))


if __name__ == "__main__":
    key = jax.random.PRNGKey(0)

    def run_case(B, N, Dx, Dy, max_tile=2048):
        nonlocal_key = jax.random.fold_in(key, B * 131 + N * 17 + Dx * 3 + Dy)
        kx_, ky_ = jax.random.split(nonlocal_key)
        x = jax.random.normal(kx_, (B, N, Dx), dtype=jnp.float32)
        y = jax.random.normal(ky_, (B, N, Dy), dtype=jnp.float32)
        out = cka_forward(x, y, max_contraction_tile=max_tile)
        jax.block_until_ready(out)
        ref = _cka_reference(x, y)
        assert out.shape == (B,)
        assert jnp.allclose(out, ref, rtol=1e-3, atol=1e-5), (out, ref)
        return out

    # Row-Gram (identity) path, single contraction step.
    run_case(B=2, N=16, Dx=32, Dy=16)
    # Feature-Gram path, single contraction step.
    run_case(B=2, N=64, Dx=8, Dy=16)
    # Feature-Gram path, multiple accumulation steps over N.
    run_case(B=2, N=32, Dx=8, Dy=16, max_tile=8)
    # Row-Gram path, unequal Dx/Dy tile counts (exercises gating + clamping).
    run_case(B=2, N=8, Dx=384, Dy=256, max_tile=128)

    print("KERNEL_OK")
</pallas_src>

<mosaic_0001>
module attributes {stable_mosaic.version = 11 : i64} {
  func.func @_cka_row_kernel(%arg0: i32, %arg1: i32, %arg2: memref<1x16x128xf32, #tpu.memory_space<vmem>>, %arg3: memref<1x16x128xf32, #tpu.memory_space<vmem>>, %arg4: memref<1x8x128xf32, #tpu.memory_space<vmem>>, %arg5: memref<16x16xf32, #tpu.memory_space<vmem>>, %arg6: memref<16x16xf32, #tpu.memory_space<vmem>>) attributes {dimension_semantics = [#tpu.dimension_semantics<parallel>, #tpu.dimension_semantics<arbitrary>], iteration_bounds = array<i64: 2, 1>, scalar_prefetch = 0 : i64, scratch_operands = 2 : i64, tpu.core_type = #tpu.core_type<tc>, window_params = [{transform_indices = @transform_0, window_bounds = array<i64: 1, 16, 128>}, {transform_indices = @transform_1, window_bounds = array<i64: 1, 16, 128>}, {transform_indices = @transform_2, window_bounds = array<i64: 1, 8, 128>}]} {
    %c0_i32 = arith.constant 0 : i32
    %0 = arith.cmpi eq, %arg1, %c0_i32 : i32
    %1 = arith.extui %0 : i1 to i32
    %c0_i32_0 = arith.constant 0 : i32
    %2 = arith.cmpi ne, %1, %c0_i32_0 : i32
    scf.if %2 {
      %cst = arith.constant 0.000000e+00 : f32
      %12 = vector.broadcast %cst : f32 to vector<16x16xf32>
      %c0 = arith.constant 0 : index
      %c0_6 = arith.constant 0 : index
      %13 = vector.load %arg5[%c0, %c0_6] : memref<16x16xf32, #tpu.memory_space<vmem>>, vector<16x16xf32>
      tpu.vector_store %arg5[%c0, %c0_6], %12 {strides = array<i32>} : memref<16x16xf32, #tpu.memory_space<vmem>>, vector<16x16xf32>,
      %cst_7 = arith.constant 0.000000e+00 : f32
      %14 = vector.broadcast %cst_7 : f32 to vector<16x16xf32>
      %c0_8 = arith.constant 0 : index
      %c0_9 = arith.constant 0 : index
      %15 = vector.load %arg6[%c0_8, %c0_9] : memref<16x16xf32, #tpu.memory_space<vmem>>, vector<16x16xf32>
      tpu.vector_store %arg6[%c0_8, %c0_9], %14 {strides = array<i32>} : memref<16x16xf32, #tpu.memory_space<vmem>>, vector<16x16xf32>,
    } else {
    }
    %c1_i32 = arith.constant 1 : i32
    %3 = arith.cmpi slt, %arg1, %c1_i32 : i32
    %4 = arith.extui %3 : i1 to i32
    %c0_i32_1 = arith.constant 0 : i32
    %5 = arith.cmpi ne, %4, %c0_i32_1 : i32
    scf.if %5 {
      %c0 = arith.constant 0 : index
      %c0_6 = arith.constant 0 : index
      %c0_7 = arith.constant 0 : index
      %12 = vector.load %arg2[%c0, %c0_6, %c0_7] : memref<1x16x128xf32, #tpu.memory_space<vmem>>, vector<1x16x128xf32>
      %13 = vector.shape_cast %12 : vector<1x16x128xf32> to vector<16x128xf32>
      %c0_8 = arith.constant 0 : index
      %c0_9 = arith.constant 0 : index
      %14 = vector.load %arg5[%c0_8, %c0_9] : memref<16x16xf32, #tpu.memory_space<vmem>>, vector<16x16xf32>
      %cst = arith.constant dense<0.000000e+00> : vector<16x16xf32>
      %15 = tpu.matmul %13, %13, %cst {dimension_numbers = #tpu.dot_dimension_numbers<[1], [1], [0], [0], [0, 0, 1, 0], [], []>} : vector<16x128xf32>, vector<16x128xf32>, vector<16x16xf32> -> vector<16x16xf32>
      %16 = arith.addf %14, %15 : vector<16x16xf32>
      %c0_10 = arith.constant 0 : index
      %c0_11 = arith.constant 0 : index
      %17 = vector.load %arg5[%c0_10, %c0_11] : memref<16x16xf32, #tpu.memory_space<vmem>>, vector<16x16xf32>
      tpu.vector_store %arg5[%c0_10, %c0_11], %16 {strides = array<i32>} : memref<16x16xf32, #tpu.memory_space<vmem>>, vector<16x16xf32>,
    } else {
    }
    %c1_i32_2 = arith.constant 1 : i32
    %6 = arith.cmpi slt, %arg1, %c1_i32_2 : i32
    %7 = arith.extui %6 : i1 to i32
    %c0_i32_3 = arith.constant 0 : i32
    %8 = arith.cmpi ne, %7, %c0_i32_3 : i32
    scf.if %8 {
      %c0 = arith.constant 0 : index
      %c0_6 = arith.constant 0 : index
      %c0_7 = arith.constant 0 : index
      %12 = vector.load %arg3[%c0, %c0_6, %c0_7] : memref<1x16x128xf32, #tpu.memory_space<vmem>>, vector<1x16x128xf32>
      %13 = vector.shape_cast %12 : vector<1x16x128xf32> to vector<16x128xf32>
      %c0_8 = arith.constant 0 : index
      %c0_9 = arith.constant 0 : index
      %14 = vector.load %arg6[%c0_8, %c0_9] : memref<16x16xf32, #tpu.memory_space<vmem>>, vector<16x16xf32>
      %cst = arith.constant dense<0.000000e+00> : vector<16x16xf32>
      %15 = tpu.matmul %13, %13, %cst {dimension_numbers = #tpu.dot_dimension_numbers<[1], [1], [0], [0], [0, 0, 1, 0], [], []>} : vector<16x128xf32>, vector<16x128xf32>, vector<16x16xf32> -> vector<16x16xf32>
      %16 = arith.addf %14, %15 : vector<16x16xf32>
      %c0_10 = arith.constant 0 : index
      %c0_11 = arith.constant 0 : index
      %17 = vector.load %arg6[%c0_10, %c0_11] : memref<16x16xf32, #tpu.memory_space<vmem>>, vector<16x16xf32>
      tpu.vector_store %arg6[%c0_10, %c0_11], %16 {strides = array<i32>} : memref<16x16xf32, #tpu.memory_space<vmem>>, vector<16x16xf32>,
    } else {
    }
    %c0_i32_4 = arith.constant 0 : i32
    %9 = arith.cmpi eq, %arg1, %c0_i32_4 : i32
    %10 = arith.extui %9 : i1 to i32
    %c0_i32_5 = arith.constant 0 : i32
    %11 = arith.cmpi ne, %10, %c0_i32_5 : i32
    scf.if %11 {
      %c0 = arith.constant 0 : index
      %c0_6 = arith.constant 0 : index
      %12 = vector.load %arg5[%c0, %c0_6] : memref<16x16xf32, #tpu.memory_space<vmem>>, vector<16x16xf32>
      %c0_7 = arith.constant 0 : index
      %c0_8 = arith.constant 0 : index
      %13 = vector.load %arg6[%c0_7, %c0_8] : memref<16x16xf32, #tpu.memory_space<vmem>>, vector<16x16xf32>
      %14 = arith.mulf %12, %12 : vector<16x16xf32>
      %15 = vector.shape_cast %14 : vector<16x16xf32> to vector<1x16x16xf32>
      %cst = arith.constant dense<0.000000e+00> : vector<1xf32>
      %16 = vector.multi_reduction <add>, %15, %cst [1, 2] : vector<1x16x16xf32> to vector<1xf32>
      %17 = vector.shape_cast %16 : vector<1xf32> to vector<1x1x1xf32>
      %18 = vector.extract %17[0, 0, 0] : f32 from vector<1x1x1xf32>
      %19 = math.sqrt %18 : f32
      %20 = arith.mulf %13, %13 : vector<16x16xf32>
      %21 = vector.shape_cast %20 : vector<16x16xf32> to vector<1x16x16xf32>
      %cst_9 = arith.constant dense<0.000000e+00> : vector<1xf32>
      %22 = vector.multi_reduction <add>, %21, %cst_9 [1, 2] : vector<1x16x16xf32> to vector<1xf32>
      %23 = vector.shape_cast %22 : vector<1xf32> to vector<1x1x1xf32>
      %24 = vector.extract %23[0, 0, 0] : f32 from vector<1x1x1xf32>
      %25 = math.sqrt %24 : f32
      %26 = arith.mulf %12, %13 : vector<16x16xf32>
      %27 = vector.shape_cast %26 : vector<16x16xf32> to vector<1x16x16xf32>
      %cst_10 = arith.constant dense<0.000000e+00> : vector<1xf32>
      %28 = vector.multi_reduction <add>, %27, %cst_10 [1, 2] : vector<1x16x16xf32> to vector<1xf32>
      %29 = vector.shape_cast %28 : vector<1xf32> to vector<1x1x1xf32>
      %30 = vector.extract %29[0, 0, 0] : f32 from vector<1x1x1xf32>
      %31 = arith.mulf %19, %25 : f32
      %32 = arith.divf %30, %31 : f32
      %33 = vector.broadcast %32 : f32 to vector<1x8x128xf32>
      %c0_11 = arith.constant 0 : index
      %c0_12 = arith.constant 0 : index
      %c0_13 = arith.constant 0 : index
      %34 = vector.load %arg4[%c0_11, %c0_12, %c0_13] : memref<1x8x128xf32, #tpu.memory_space<vmem>>, vector<1x8x128xf32>
      tpu.vector_store %arg4[%c0_11, %c0_12, %c0_13], %33 {strides = array<i32>} : memref<1x8x128xf32, #tpu.memory_space<vmem>>, vector<1x8x128xf32>,
    } else {
    }
    return
  }
  func.func @transform_0(%arg0: i32, %arg1: i32) -> (i32, i32, i32) {
    %c0_i32 = arith.constant 0 : i32
    %0 = arith.minsi %arg1, %c0_i32 : i32
    %c0_i32_0 = arith.constant 0 : i32
    %c0_i32_1 = arith.constant 0 : i32
    return %arg0, %c0_i32_0, %0 : i32, i32, i32
  }
  func.func @transform_1(%arg0: i32, %arg1: i32) -> (i32, i32, i32) {
    %c0_i32 = arith.constant 0 : i32
    %0 = arith.minsi %arg1, %c0_i32 : i32
    %c0_i32_0 = arith.constant 0 : i32
    %c0_i32_1 = arith.constant 0 : i32
    return %arg0, %c0_i32_0, %0 : i32, i32, i32
  }
  func.func @transform_2(%arg0: i32, %arg1: i32) -> (i32, i32, i32) {
    %c0_i32 = arith.constant 0 : i32
    %c0_i32_0 = arith.constant 0 : i32
    %c0_i32_1 = arith.constant 0 : i32
    return %arg0, %c0_i32, %c0_i32_0 : i32, i32, i32
  }
}

</mosaic_0001>

<bundles_post_ra>
// kernel: tpu_custom_call.1
= control target key start
LH: loop header
LB: loop body
LE: loop exit
PB: predicated region body
PF: predicated region fallthrough
CT: control target
= control target key end

     0   :  { %7 = vsyncpa [#allocation5], 0  ;;  %s1166_s0 = inlined_call_operand.hbm [shape: f32[2,16,128], index: 0, kind: input, shape index: {}]   ;;  %s1167_s1 = inlined_call_operand.hbm [shape: f32[2,16,128], index: 1, kind: input, shape index: {}]   ;;  %s1168_s2 = inlined_call_operand.hbm [shape: f32[2,8,128], index: 2, kind: output, shape index: {}]  }
   0x1   :  { %9 = vsyncpa [#allocation5 + $0x1], 0 }
   0x2   :  { %10 = vsyncpa [#allocation8], 0 }
   0x3   :  { %12 = vsyncpa [#allocation8 + $0x1], 0 }
   0x4   :  { %13 = vsyncpa [#allocation6], 0 }
   0x5   :  { %15 = vsyncpa [#allocation6 + $0x1], 0  ;;  %s917_s9 = smov 0   ;;  %s919_s10 = smov 0  }
   0x6   :  { %s921_s11 = smov 0   ;;  %s923_s12 = smov 0  }
   0x7   :  { %s925_s13 = smov 0   ;;  %s927_s14 = smov 0  }
   0x8 LB: > { %s610_s15 = sadd.s32 4294967295, %s894_s14   ;;  %s611_s16 = sadd.s32 4294967294, %s894_s14   ;;  %s894_s14 = sphi %s927_s14, %s21_s14   ;;  %s890_s13 = sphi %s925_s13, %s1186_s13   ;;  %s886_s12 = sphi %s923_s12, %s1185_s12   ;;  %s882_s11 = sphi %s921_s11, %s1184_s11   ;;  %s878_s10 = sphi %s919_s10, %s1183_s10   ;;  %s874_s9 = sphi %s917_s9, %s1182_s9  }
   0x9   : > { %s33_s17 = sadd.s32 1, %s890_s13  ;;  %s46_s18 = sadd.s32 1, %s882_s11 }
   0xa   : > { %p35_p0 = scmp.ge.s32.totalorder %s33_s17, 2  ;;  %p53_p1 = scmp.ne.s32.totalorder %s882_s11, %s878_s10 }
   0xb   : > { %p54_p2 = scmp.eq.s32.totalorder %s894_s14, 0  ;;  %p59_p3 = scmp.ne.s32.totalorder %s878_s10, %s874_s9 }
   0xc   : > { %s1188_s17 = smov (%p35_p0, %s33_s17), 0  ;;  %p60_p5 = scmp.eq.s32.totalorder %s610_s15, 0 }
   0xd   : > { %p958_p4 = por %p54_p2, %p53_p1  ;;  %s41_s20 = ssub.s32 %s890_s13, %s1188_s17 }
   0xe   : > { %p115_p6 = scmp.eq.s32.totalorder %s610_s15, 1  ;;  %p44_p7 = scmp.eq.s32.totalorder %s41_s20, 0 }
   0xf   : > { %p964_p8 = por %p60_p5, %p59_p3  ;;  %p121_p10 = scmp.eq.s32.totalorder %s611_s16, 1 }
  0x10   : > { %p968_p9 = por %p115_p6, %p53_p1  ;;  %p689_p13 = scmp.lt.s32.totalorder %s894_s14, 2 }
  0x11   : > { %s1172_s21 = scalar_select %p964_p8, 1, 0 }
  0x12   : > { %s1173_s22 = scalar_select %p968_p9, 1, 0 }
  0x13   : > { %s973_s23 = scalar_select %p44_p7, %s882_s11, %s46_s18  }
  0x14   : > { %p975_p11 = por %p121_p10, %p59_p3  ;;  %s982_s25 = sand.u32 1, %s882_s11  }
  0x15   : > { %s614_s26 = sshll.u32 %s982_s25, 4  ;;  %s628_s27 = sshll.u32 %s890_s13, 8 }
  0x16   : > { %s1174_s24 = scalar_select %p975_p11, 1, 0 }
  0x17   : > { %s991_s30 = scalar_lea.hbm %s1166_s0, %s628_s27  ;;  %s145_s3 = scalar_lea.vmem [#allocation4], %s614_s26 }
  0x18   : > { %s155_s4 = sshll.u32 %s145_s3, 4  ;;  %p999_p0 = pnand %p689_p13, %p958_p4  ;;  %s995_s4 = int_to_ptr.vmem [resolvable:$true] %s155_s4 }
  0x19   : > { %s142_s6 = scalar_lea.sflag [#allocation5], %s982_s25  ;;  %s748_s7 = scalar_lea.hbm %s991_s30, 256 }
  0x1a   : > { %p749_p2 = scmp.ne.s32.totalorder %s991_s30, %s748_s7  ;;  %p750_p3 = pneg %p999_p0 }
  0x1b   : > { %s753_s16 = scalar_lea.hbm %s1166_s0, 512  ;;  %p754_p4 = scmp.lt.u32.totalorder %s991_s30, %s1166_s0 }
  0x1c   : > { %p751_p5 = pnand %p750_p3, %p749_p2  ;;  %p755_p7 = scmp.lt.u32.totalorder %s753_s16, %s748_s7 }
  0x1d   : > { %p757_p13 = scmp.lt.u32.totalorder %s748_s7, %s991_s30 }
  0x1e   : > { %p752_p6 = pneg %p751_p5  ;;  %p756_p10 = por %p755_p7, %p754_p4 }
  0x20   : > { %p758_p12 = por %p757_p13, %p756_p10 }
  0x22   : > { %p759_p1 = pnand %p758_p12, %p752_p6 }
  0x24   : > { %762 = shalt.err (!%p759_p1)
}
  0x25   : > { %s763_s20 = scalar_lea.vmem %s995_s4, 256  ;;  %s896_s28 = smov [#allocation4]  }
  0x26   : > { %p764_p2 = scmp.ne.s32.totalorder %s995_s4, %s763_s20  ;;  %s768_s29 = sshll.u32 %s896_s28, 4  ;;  %s769_s29 = int_to_ptr.vmem [resolvable:$false] %s768_s29 }
  0x27   : > { %s770_s3 = scalar_lea.vmem %s769_s29, 512  ;;  %p771_p9 = scmp.lt.s32.totalorder %s995_s4, %s769_s29 }
  0x28   : > { %p766_p5 = pnand %p764_p2, %p750_p3  ;;  %p772_p4 = scmp.lt.s32.totalorder %s770_s3, %s763_s20 }
  0x2a   : > { %p767_p11 = pneg %p766_p5  ;;  %p773_p7 = por %p772_p4, %p771_p9 }
  0x2c   : > { %p774_p10 = pnand %p773_p7, %p767_p11 }
  0x2e   : > { %777 = shalt.err (!%p774_p10)
}
  0x2f   : > { %s897_s7 = smov 128   ;;  %s898_s8 = smov 8  }
  0x30   : > { %681 = dma.hbm_to_vmem [thread:$0]  (!%p999_p0), %s991_s30, 256, %s995_s4, %s142_s6, %s897_s7, %s897_s7, %s898_s8  }
  0x31   : > { %p187_p9 = scmp.lt.s32.totalorder %s894_s14, 3  ;;  %s1041_s18 = scalar_lea.hbm %s1167_s1, %s628_s27 }
  0x32   : > { %p1176_p11 = scmp.ge.s32.totalorder %s894_s14, 1  ;;  %s169_s20 = scalar_lea.vmem [#allocation7], %s614_s26 }
  0x33   : > { %s179_s28 = sshll.u32 %s169_s20, 4  ;;  %s166_s30 = scalar_lea.sflag [#allocation8], %s982_s25  ;;  %s1051_s28 = int_to_ptr.vmem [resolvable:$true] %s179_s28 }
  0x34   : > { %p1045_p12 = pnand %p1176_p11, %p187_p9  ;;  %s778_s4 = scalar_lea.hbm %s1041_s18, 256 }
  0x35   : > { %p779_p1 = scmp.ne.s32.totalorder %s1041_s18, %s778_s4  ;;  %s783_s29 = scalar_lea.hbm %s1167_s1, 512 }
  0x36   : > { %p784_p2 = scmp.lt.u32.totalorder %s1041_s18, %s1167_s1  ;;  %p785_p5 = scmp.lt.u32.totalorder %s783_s29, %s778_s4 }
  0x37   : > { %p781_p6 = pnand %p779_p1, %p750_p3  ;;  %p787_p7 = scmp.lt.u32.totalorder %s778_s4, %s1041_s18 }
  0x38   : > { %p786_p4 = por %p785_p5, %p784_p2 }
  0x39   : > { %p782_p13 = pneg %p781_p6 }
  0x3a   : > { %p788_p10 = por %p787_p7, %p786_p4 }
  0x3c   : > { %p789_p9 = pnand %p788_p10, %p782_p13 }
  0x3e   : > { %792 = shalt.err (!%p789_p9)
}
  0x3f   : > { %s793_s26 = scalar_lea.vmem %s1051_s28, 256  ;;  %s899_s16 = smov [#allocation7]  }
  0x40   : > { %p794_p11 = scmp.ne.s32.totalorder %s1051_s28, %s793_s26  ;;  %s798_s20 = sshll.u32 %s899_s16, 4  ;;  %s799_s20 = int_to_ptr.vmem [resolvable:$false] %s798_s20 }
  0x41   : > { %s800_s27 = scalar_lea.vmem %s799_s20, 512  ;;  %p801_p8 = scmp.lt.s32.totalorder %s1051_s28, %s799_s20 }
  0x42   : > { %p796_p1 = pnand %p794_p11, %p750_p3  ;;  %p802_p2 = scmp.lt.s32.totalorder %s800_s27, %s793_s26 }
  0x44   : > { %p797_p6 = pneg %p796_p1  ;;  %p803_p5 = por %p802_p2, %p801_p8 }
  0x46   : > { %p804_p4 = pnand %p803_p5, %p797_p6 }
  0x48   : > { %807 = shalt.err (!%p804_p4)
}
  0x49   : > { %684 = dma.hbm_to_vmem [thread:$0]  (!%p999_p0), %s1041_s18, 256, %s1051_s28, %s166_s30, %s897_s7, %s897_s7, %s898_s8  }
  0x4a   : > { %191 = sbr.rel (%p1045_p12) target bundleno = 741 (0x2e5), region = 28  ;;  %s1085_s4 = sand.u32 (!%p1045_p12), 1, %s878_s10  }
  0x4b   : > { %s621_s6 = sshll.u32 (!%p1045_p12), %s1085_s4, 4  ;;  %s194_s29 = scalar_lea.sflag (!%p1045_p12), [#allocation5], %s1085_s4 }
  0x4c   : > { %s197_s5 = scalar_lea.vmem (!%p1045_p12), [#allocation4], %s621_s6  ;;  %p1178_p8 = scmp.ne.s32.totalorder (!%p1045_p12), %s1172_s21, 0 }
  0x51   : > { %861 = dma.done.wait (%p1178_p8), %s194_s29, 256  }
  0x52   : > { %863 = vsyncadd (%p1178_p8), %s194_s29, 4294967040  ;;  %s203_s25 = scalar_lea.sflag [#allocation8], %s1085_s4  ;;  %s206_s7 = scalar_lea.vmem [#allocation7], %s621_s6 }
  0x53   : > { %865 = dma.done.wait (%p1178_p8), %s203_s25, 256  }
  0x54   : > { %867 = vsyncadd (%p1178_p8), %s203_s25, 4294967040  ;;  %vm240_vm0 = vcmask 130048   ;;  %v900_v0 = vmov 0.0   ;;  %v249_v1 = vld [vmem:[%s197_s5] sm:$0xff]  ;;  %v250_v2 = vld [vmem:[%s197_s5 + $0x8] sm:$0xff]  ;;  %s623_s30 = sshll.u32 %s1085_s4, 3 }
  0x55   : > { %242 = vst.msk [vmem:[#allocation2 + $0x8] sm:$0xff] %vm240_vm0, %v900_v0  ;;  %241 = vst.msk [vmem:[#allocation2] sm:$0xff] %vm240_vm0, %v900_v0  ;;  %v333_v3 = vld [vmem:[%s206_s7] sm:$0xff]  ;;  %v652_v4 = vpack.c.bf16 %v250_v2, %v249_v1  ;;  %v334_v5 = vld [vmem:[%s206_s7 + $0x8] sm:$0xff]  ;;  %642 = vmatprep.mubr.f32.mxu0 %v249_v1  ;;  %s625_s3 = sshll.u32 %s886_s12, 7  ;;  %s231_s26 = scalar_lea.vmem [#allocation9], %s623_s30 }
  0x56   : > { %243 = vst.msk [vmem:[#allocation3] sm:$0xff] %vm240_vm0, %v900_v0  ;;  %244 = vst.msk [vmem:[#allocation3 + $0x8] sm:$0xff] %vm240_vm0, %v900_v0  ;;  %649 = vmatprep.mubr.f32.mxu1 %v333_v3  ;;  %v656_v6 = vpack.c.bf16 %v334_v5, %v333_v3  ;;  %s505_s16 = sshll.u32 %s231_s26, 4  ;;  %s1117_s5 = scalar_lea.hbm %s1168_s2, %s625_s3  ;;  %s1119_s16 = int_to_ptr.vmem [resolvable:$true] %s505_s16 }
  0x57   : > { %653 = vmatprep.subr.bf16.mxu0 %v652_v4  ;;  %s492_s25 = scalar_lea.sflag [#allocation6], %s1085_s4  ;;  %s808_s7 = scalar_lea.vmem %s1119_s16, 128 }
  0x58   : > { %657 = vmatprep.subr.bf16.mxu1 %v656_v6  ;;  %655 = vmatpush3.bf16.xpose.msra.mxu0 %v652_v4  ;;  %p809_p0 = scmp.ne.s32.totalorder %s1119_s16, %s808_s7  ;;  %p1179_p3 = scmp.ne.s32.totalorder %s1173_s22, 0 }
  0x59   : > { %659 = vmatpush3.bf16.xpose.msra.mxu1 %v656_v6  ;;  %s901_s12 = smov [#allocation9]  }
  0x5a   : > { %p810_p12 = pnand %p809_p0, %p1179_p3 }
  0x5c   : > { %v252_v7 = vld [vmem:[#allocation2 + $0x8] sm:$0xff]  ;;  %v251_v9 = vld [vmem:[#allocation2] sm:$0xff]  ;;  %p811_p13 = pneg %p810_p12 }
  0x5d   : > { %v336_v8 = vld [vmem:[#allocation3 + $0x8] sm:$0xff]  ;;  %v335_v11 = vld [vmem:[#allocation3] sm:$0xff] }
  0x5f   : > { %643 = vmatmul.mubr.f32.vlgmr.msra.gmra.mrb[0].mxu0 %v250_v2 }
  0x60   : > { %650 = vmatmul.mubr.f32.vlgmr.msra.gmra.mrb[0].mxu1 %v334_v5 }
 0x132   : > { %v644_v10 = vpop.f32.mrb[0].mxu0 }
 0x133   : > { %v329_v12 = vadd.f32 %v644_v10, %v252_v7  ;;  %v651_v13 = vpop.f32.mrb[0].mxu1  ;;  %v319_v14 = vpop.f32.mrb[1].mxu0 }
 0x134   : > { %v413_v15 = vadd.f32 %v651_v13, %v336_v8  ;;  %v328_v16 = vadd.f32 %v319_v14, %v251_v9  ;;  %v403_v17 = vpop.f32.mrb[1].mxu1 }
 0x135   : > { %332 = vst.msk [vmem:[#allocation2 + $0x8] sm:$0xff] %vm240_vm0, %v329_v12  ;;  %v412_v18 = vadd.f32 %v403_v17, %v335_v11 }
 0x136   : > { %415 = vst.msk [vmem:[#allocation3 + $0x8] sm:$0xff] %vm240_vm0, %v413_v15  ;;  %331 = vst.msk [vmem:[#allocation2] sm:$0xff] %vm240_vm0, %v328_v16 }
 0x137   : > { %414 = vst.msk [vmem:[#allocation3] sm:$0xff] %vm240_vm0, %v412_v18 }
 0x13c   : > { %v420_v19 = vld [vmem:[#allocation2 + $0x8] sm:$0xff] }
 0x13d   : > { %v419_v20 = vld [vmem:[#allocation2] sm:$0xff]  ;;  %v422_v21 = vld [vmem:[#allocation3 + $0x8] sm:$0xff]  ;;  %v424_v22 = vmul.f32 %v420_v19, %v420_v19 }
 0x13e   : > { %v421_v23 = vld [vmem:[#allocation3] sm:$0xff]  ;;  %v471_v24 = vmul.f32 %v422_v21, %v420_v19  ;;  %v423_v25 = vmul.f32 %v419_v20, %v419_v20  ;;  %v448_v26 = vmul.f32 %v422_v21, %v422_v21 }
 0x13f   : > { %v470_v27 = vmul.f32 %v421_v23, %v419_v20  ;;  %v427_v28 = vsel %vm240_vm0, %v424_v22, 0.0  ;;  %v447_v29 = vmul.f32 %v421_v23, %v421_v23 }
 0x140   : > { %v473_v30 = vsel %vm240_vm0, %v471_v24, 0.0  ;;  %v426_v31 = vsel %vm240_vm0, %v423_v25, 0.0  ;;  %v450_v32 = vsel %vm240_vm0, %v448_v26, 0.0 }
 0x141   : > { %v472_v33 = vsel %vm240_vm0, %v470_v27, 0.0  ;;  %v428_v34 = vadd.f32 %v427_v28, %v426_v31  ;;  %v449_v35 = vsel %vm240_vm0, %v447_v29, 0.0 }
 0x142   : > { %v474_v36 = vadd.f32 %v473_v30, %v472_v33  ;;  %v451_v37 = vadd.f32 %v450_v32, %v449_v35 }
 0x143   : > { %429 = vadd.xlane.f32.xlu0 %v428_v34 }
 0x144   : > { %475 = vadd.xlane.f32.xlu1 %v474_v36 }
 0x147   : > { %452 = vadd.xlane.f32.xlu0 %v451_v37 }
 0x1d0   : > { %v430_v38 = vpop.xlane.xlu0 %429 }
 0x1d1   : > { %v431_v39 = vrot.slane %v430_v38, 4  ;;  %v476_v58 = vpop.xlane.xlu1 %475 }
 0x1d2   : > { %v477_v59 = vrot.slane %v476_v58, 4 }
 0x1d3   : > { %v432_v40 = vadd.f32 %v431_v39, %v430_v38 }
 0x1d4   : > { %v453_v45 = vpop.xlane.xlu0 %452  ;;  %v478_v60 = vadd.f32 %v477_v59, %v476_v58 }
 0x1d5   : > { %v433_v41 = vrot.slane %v432_v40, 2  ;;  %v454_v46 = vrot.slane %v453_v45, 4 }
 0x1d6   : > { %v479_v62 = vrot.slane %v478_v60, 2 }
 0x1d7   : > { %v434_v42 = vadd.f32 %v433_v41, %v432_v40  ;;  %v455_v47 = vadd.f32 %v454_v46, %v453_v45 }
 0x1d8   : > { %v480_v63 = vadd.f32 %v479_v62, %v478_v60 }
 0x1d9   : > { %v435_v43 = vrot.slane %v434_v42, 1  ;;  %v456_v49 = vrot.slane %v455_v47, 2 }
 0x1da   : > { %v481_v1 = vrot.slane %v480_v63, 1 }
 0x1db   : > { %v436_v44 = vadd.f32 %v435_v43, %v434_v42  ;;  %v457_v50 = vadd.f32 %v456_v49, %v455_v47 }
 0x1dc   : > { %v482_v6 = vadd.f32 %v481_v1, %v480_v63 }
 0x1dd   : > { %660 = vpush %v436_v44  ;;  %v458_v52 = vrot.slane %v457_v50, 1 }
 0x1df   : > { %v459_v57 = vadd.f32 %v458_v52, %v457_v50 }
 0x20e   : > { %s661_s21 = spop %660 }
 0x20f   : > { %v438_v48 = vstv %s661_s21  ;;  %s812_s21 = sshll.u32 %s901_s12, 4  ;;  %s813_s21 = int_to_ptr.vmem [resolvable:$false] %s812_s21 }
 0x210   : > { %742 = vrsqrt.f32 %v438_v48  ;;  %vm441_vm1 = vcmp.eq.f32.partialorder %v438_v48, inf  ;;  %v444_v54 = vand.u32 2147483648, %v438_v48  ;;  %vm443_vm2 = vcmp.eq.f32.partialorder %v438_v48, 0.0  ;;  %p815_p7 = scmp.lt.s32.totalorder %s1119_s16, %s813_s21 }
 0x21a   : > { %v743_v51 = vpop.eup %742 }
 0x21b   : > { %v440_v53 = vmul.f32 %v743_v51, %v438_v48 }
 0x21d   : > { %v442_v55 = vsel %vm441_vm1, %v438_v48, %v440_v53 }
 0x21e   : > { %v445_v56 = vsel %vm443_vm2, %v444_v54, %v442_v55 }
 0x21f   : > { %662 = vpush %v445_v56 }
 0x220   : > { %664 = vpush %v459_v57 }
 0x250   : > { %s663_s8 = spop %662 }
 0x251   : > { %s665_s18 = spop %664 }
 0x252   : > { %v461_v61 = vstv %s665_s18 }
 0x253   : > { %744 = vrsqrt.f32 %v461_v61  ;;  %vm464_vm3 = vcmp.eq.f32.partialorder %v461_v61, inf  ;;  %v467_v3 = vand.u32 2147483648, %v461_v61  ;;  %vm466_vm4 = vcmp.eq.f32.partialorder %v461_v61, 0.0 }
 0x25d   : > { %v745_v0 = vpop.eup %744 }
 0x25e   : > { %v463_v2 = vmul.f32 %v745_v0, %v461_v61 }
 0x260   : > { %v465_v4 = vsel %vm464_vm3, %v461_v61, %v463_v2 }
 0x261   : > { %v468_v5 = vsel %vm466_vm4, %v467_v3, %v465_v4 }
 0x262   : > { %666 = vpush %v468_v5 }
 0x263   : > { %668 = vpush %v482_v6 }
 0x293   : > { %s667_s19 = spop %666 }
 0x294   : > { %s484_s28 = smul.f32 %s667_s19, %s663_s8  ;;  %s669_s15 = spop %668 }
 0x295   : > { %s814_s8 = scalar_lea.vmem %s813_s21, 256 }
 0x296   : > { %v485_v7 = vstv %s484_s28  ;;  %p816_p10 = scmp.lt.s32.totalorder %s814_s8, %s808_s7 }
 0x297   : > { %746 = vrcp.f32 %v485_v7 }
 0x298   : > { %p817_p9 = por %p816_p10, %p815_p7 }
 0x29a   : > { %p818_p11 = pnand %p817_p9, %p811_p13 }
 0x2a1   : > { %v747_v8 = vpop.eup %746 }
 0x2a2   : > { %670 = vpush %v747_v8 }
 0x2d3   : > { %s671_s20 = spop %670 }
 0x2d4   : > { %s488_s27 = smul.f32 %s671_s20, %s669_s15 }
 0x2d6   : > { %v489_v9 = vstv %s488_s27 }
 0x2d7   : > { %490 = vst [vmem:[%s231_s26] sm:$0xff] %v489_v9 }
 0x2d8   : > { %821 = shalt.err (!%p818_p11)
}
 0x2d9   : > { %s822_s4 = scalar_lea.hbm %s1117_s5, 128  ;;  %s826_s28 = scalar_lea.hbm %s1168_s2, 256 }
 0x2da   : > { %p823_p1 = scmp.ne.s32.totalorder %s1117_s5, %s822_s4  ;;  %p827_p5 = scmp.lt.u32.totalorder %s1117_s5, %s1168_s2 }
 0x2db   : > { %p828_p4 = scmp.lt.u32.totalorder %s826_s28, %s822_s4  ;;  %p830_p0 = scmp.lt.u32.totalorder %s822_s4, %s1117_s5 }
 0x2dc   : > { %p824_p6 = pnand %p823_p1, %p1179_p3 }
 0x2dd   : > { %p829_p8 = por %p828_p4, %p827_p5 }
 0x2de   : > { %p825_p2 = pneg %p824_p6 }
 0x2df   : > { %p831_p12 = por %p830_p0, %p829_p8 }
 0x2e1   : > { %p832_p13 = pnand %p831_p12, %p825_p2 }
 0x2e3   : > { %835 = shalt.err (!%p832_p13)
}
 0x2e4   : > { %676 = dma.vmem_to_hbm [thread:$0]  (%p1179_p3), %s1119_s16, 128, %s1117_s5, %s492_s25  }
 0x2e5 PF: > { %s517_s15 = sand.u32 1, %s874_s9   ;;  %p1180_p7 = scmp.ne.s32.totalorder %s1174_s24, 0 }
 0x2e6   : > { %p1181_p10 = scmp.ge.s32.totalorder %s894_s14, 2  ;;  %s518_s26 = scalar_lea.sflag [#allocation6], %s517_s15 }
 0x2e8   : > { %p686_p9 = pnand %p1181_p10, %p1180_p7 }
 0x2ea   : > { %869 = dma.done.wait (!%p686_p9), %s518_s26, 128  }
 0x2eb   : > { %871 = vsyncadd (!%p686_p9), %s518_s26, 4294967168  ;;  %s21_s14 = sadd.s32 1, %s894_s14   ;;  %s1182_s9 = smov %s878_s10 }
 0x2ec   : > { %p18_p11 = scmp.ge.s32.totalorder %s21_s14, 4   ;;  %s1183_s10 = smov %s882_s11 }
 0x2ed   : > { %s1184_s11 = smov %s973_s23  ;;  %s1185_s12 = smov %s890_s13 }
 0x2ee   : > { %s1186_s13 = smov %s1188_s17  ;;  %20 = sbr.rel (!%p18_p11) target bundleno = 8 (0x8), region = 98 }
 0x2f5   :  { %523 = vsyncpa [#allocation5], 1 }
 0x2f6   :  { %525 = vsyncpa [#allocation5 + $0x1], 1 }
 0x2f7   :  { %526 = vsyncpa [#allocation8], 1 }
 0x2f8   :  { %528 = vsyncpa [#allocation8 + $0x1], 1 }
 0x2f9   :  { %529 = vsyncpa [#allocation6], 1 }
 0x2fa   :  { %531 = vsyncpa [#allocation6 + $0x1], 1 }

</bundles_post_ra>
